<compile_context>
chip_gen: v7x
topology: tpu7x:2x2x1
jax: 0.10.0
libtpu: 0.0.40
codegen_flags: <defaults>
</compile_context>

<pallas_src>
import jax
import jax.numpy as jnp
from jax.experimental import pallas as pl
from jax.experimental.pallas import tpu as pltpu


def _round_up(x, m):
    return (x + m - 1) // m * m


def _cdiv(a, b):
    return (a + b - 1) // b


def user_tower_kernel(ids_ref, t1_ref, b1_ref, w2_ref, b2_ref, o_ref):
    # ids_ref: [TB, 1]        int32   (user ids for this batch tile)
    # t1_ref:  [NU_pad, H0]   bf16    (folded table: emb_table @ w1, VMEM-resident)
    # b1_ref:  [1, H0]        f32
    # w2_ref:  [H0, H1]       bf16
    # b2_ref:  [1, H1]        f32
    # o_ref:   [TB, H1]       f32
    nu = t1_ref.shape[0]

    # One-hot row-select built from a (1, NU) iota broadcast against (TB, 1) ids.
    ids = ids_ref[...]                                              # (TB, 1) i32
    iota = jax.lax.broadcasted_iota(jnp.int32, (1, nu), 1)          # (1, NU) i32
    one_hot = (ids == iota).astype(jnp.bfloat16)                    # (TB, NU) bf16

    # Fused embedding gather + Linear(E, H0) (exact row-select of bf16(table@w1)
    # rows, f32 accumulate), then bias + ReLU in f32.
    h = jnp.dot(one_hot, t1_ref[...],
                preferred_element_type=jnp.float32) + b1_ref[...]   # (TB, H0) f32
    h = jnp.maximum(h, 0.0)

    # Linear(H0, H1) + ReLU (bf16 operands, f32 accumulate).
    y = jnp.dot(h.astype(jnp.bfloat16), w2_ref[...],
                preferred_element_type=jnp.float32) + b2_ref[...]   # (TB, H1) f32
    y = jnp.maximum(y, 0.0)

    o_ref[...] = y.astype(o_ref.dtype)


def user_tower_forward(user_input, emb_table, w1, b1, w2, b2, *, tile_b=512):
    """user_input: int [B, 1] (or [B]); returns f32 [B, hidden_units[1]]."""
    ids = user_input.reshape(-1).astype(jnp.int32)
    B = ids.shape[0]
    NU, E = emb_table.shape
    H0 = w1.shape[1]
    H1 = w2.shape[1]

    # --- batch tile selection --------------------------------------------------
    # Few, big tiles for large B (amortize per-step overhead); for small B size
    # the tile to the work (low padding waste) and keep the tile count even when
    # > 1 so v7x's two TensorCores split the "parallel" axis evenly.
    n_tiles = max(1, _cdiv(B, tile_b))
    if n_tiles > 1 and n_tiles % 2:
        n_tiles += 1
    tb = _round_up(_cdiv(B, n_tiles), 8)
    b_pad = n_tiles * tb
    # Padded rows reuse id 0 and are sliced off after the call.
    ids_p = jnp.pad(ids, (0, b_pad - B)).reshape(b_pad, 1)

    # --- fold Linear layer 1 into the embedding table ---------------------------
    # one_hot @ table is a pure row-select, so (one_hot@table)@w1 == one_hot@(table@w1).
    t1 = emb_table.astype(jnp.float32) @ w1.astype(jnp.float32)        # (NU, H0) f32
    nu_pad = _round_up(NU, 128)                                        # lane-dense contraction
    t1_bf16 = jnp.pad(t1, ((0, nu_pad - NU), (0, 0))).astype(jnp.bfloat16)

    w2_bf16 = w2.astype(jnp.bfloat16)
    b1_f32 = b1.reshape(1, H0).astype(jnp.float32)
    b2_f32 = b2.reshape(1, H1).astype(jnp.float32)

    out = pl.pallas_call(
        user_tower_kernel,
        out_shape=jax.ShapeDtypeStruct((b_pad, H1), jnp.float32),
        grid_spec=pltpu.PrefetchScalarGridSpec(
            num_scalar_prefetch=0,
            grid=(n_tiles,),
            in_specs=[
                pl.BlockSpec((tb, 1), lambda i: (i, 0)),         # ids: streamed per tile
                pl.BlockSpec((nu_pad, H0), lambda i: (0, 0)),    # folded table: resident
                pl.BlockSpec((1, H0), lambda i: (0, 0)),         # b1: resident
                pl.BlockSpec((H0, H1), lambda i: (0, 0)),        # w2: resident
                pl.BlockSpec((1, H1), lambda i: (0, 0)),         # b2: resident
            ],
            out_specs=pl.BlockSpec((tb, H1), lambda i: (i, 0)),
        ),
        compiler_params=pltpu.CompilerParams(
            # Independent batch tiles -> parallel (sharded over v7x's 2 TCs;
            # harmless on single-TC v5e/v6e).
            dimension_semantics=("parallel",),
            vmem_limit_bytes=32 * 1024 * 1024,
        ),
    )(ids_p, t1_bf16, b1_f32, w2_bf16, b2_f32)

    return out[:B]


if __name__ == "__main__":
    # Module hyperparameters (from the PyTorch script).
    num_users = 1000
    embedding_dim = 64
    hidden_units = [128, 64]

    # Deterministic synthetic parameters (not a checkpoint load).
    key = jax.random.PRNGKey(0)
    k_emb, k_w1, k_b1, k_w2, k_b2, k_in = jax.random.split(key, 6)

    emb_table = jax.random.normal(k_emb, (num_users, embedding_dim), jnp.float32)
    # Stored as [in, out] == PyTorch nn.Linear weight transposed.
    w1 = jax.random.normal(k_w1, (embedding_dim, hidden_units[0]), jnp.float32) * 0.05
    b1 = jax.random.normal(k_b1, (1, hidden_units[0]), jnp.float32) * 0.05
    w2 = jax.random.normal(k_w2, (hidden_units[0], hidden_units[1]), jnp.float32) * 0.05
    b2 = jax.random.normal(k_b2, (1, hidden_units[1]), jnp.float32) * 0.05

    # Batch of user ids, shape [B, 1] (matches the .squeeze(1) in forward).
    # B=260 with tile_b=128 -> 4 tiles of 72 rows (even tile count, ~10% padding),
    # exercising the pipelined grid and the padding/slice path.
    B = 260
    user_input = jax.random.randint(k_in, (B, 1), 0, num_users, jnp.int32)

    out = user_tower_forward(user_input, emb_table, w1, b1, w2, b2, tile_b=128)
    out = jax.block_until_ready(out)

    # Pure-JAX f32 reference (same math as the PyTorch forward).
    ref = emb_table[user_input[:, 0]]
    ref = jnp.maximum(ref @ w1 + b1, 0.0)
    ref = jnp.maximum(ref @ w2 + b2, 0.0)

    assert out.shape == (B, hidden_units[1])
    # bf16 folded-table / weight operands (f32 accumulate) -> loosened tolerance
    # vs. the pure-f32 reference.
    assert jnp.allclose(out, ref, atol=3e-2, rtol=3e-2), float(jnp.max(jnp.abs(out - ref)))

    print("KERNEL_OK")
</pallas_src>

<mosaic_0001>
module attributes {stable_mosaic.version = 11 : i64} {
  func.func @user_tower_kernel(%arg0: i32, %arg1: memref<72x1xi32, #tpu.memory_space<vmem>>, %arg2: memref<1024x128xbf16, #tpu.memory_space<vmem>>, %arg3: memref<1x128xf32, #tpu.memory_space<vmem>>, %arg4: memref<128x64xbf16, #tpu.memory_space<vmem>>, %arg5: memref<1x64xf32, #tpu.memory_space<vmem>>, %arg6: memref<72x64xf32, #tpu.memory_space<vmem>>) attributes {dimension_semantics = [#tpu.dimension_semantics<parallel>], iteration_bounds = array<i64: 4>, scalar_prefetch = 0 : i64, scratch_operands = 0 : i64, tpu.core_type = #tpu.core_type<tc>, window_params = [{transform_indices = @transform_0, window_bounds = array<i64: 72, 1>}, {pipeline_mode = #tpu.pipeline_mode<synchronous>, transform_indices = @transform_1, window_bounds = array<i64: 1024, 128>}, {pipeline_mode = #tpu.pipeline_mode<synchronous>, transform_indices = @transform_2, window_bounds = array<i64: 1, 128>}, {pipeline_mode = #tpu.pipeline_mode<synchronous>, transform_indices = @transform_3, window_bounds = array<i64: 128, 64>}, {pipeline_mode = #tpu.pipeline_mode<synchronous>, transform_indices = @transform_4, window_bounds = array<i64: 1, 64>}, {transform_indices = @transform_5, window_bounds = array<i64: 72, 64>}]} {
    %c0 = arith.constant 0 : index
    %c0_0 = arith.constant 0 : index
    %0 = vector.load %arg1[%c0, %c0_0] : memref<72x1xi32, #tpu.memory_space<vmem>>, vector<72x1xi32>
    %1 = tpu.iota {dimensions = array<i32: 1>} : vector<1x1024xi32>
    %2 = vector.broadcast %0 : vector<72x1xi32> to vector<72x1024xi32>
    %3 = vector.broadcast %1 : vector<1x1024xi32> to vector<72x1024xi32>
    %4 = arith.cmpi eq, %2, %3 : vector<72x1024xi32>
    %5 = arith.extui %4 : vector<72x1024xi1> to vector<72x1024xi32>
    %6 = arith.sitofp %5 : vector<72x1024xi32> to vector<72x1024xf32>
    %7 = arith.truncf %6 : vector<72x1024xf32> to vector<72x1024xbf16>
    %c0_1 = arith.constant 0 : index
    %c0_2 = arith.constant 0 : index
    %8 = vector.load %arg2[%c0_1, %c0_2] : memref<1024x128xbf16, #tpu.memory_space<vmem>>, vector<1024x128xbf16>
    %cst = arith.constant dense<0.000000e+00> : vector<72x128xf32>
    %9 = tpu.matmul %7, %8, %cst {dimension_numbers = #tpu.dot_dimension_numbers<[1], [0], [0], [1], [0, 0, 1, 1], [], []>} : vector<72x1024xbf16>, vector<1024x128xbf16>, vector<72x128xf32> -> vector<72x128xf32>
    %c0_3 = arith.constant 0 : index
    %c0_4 = arith.constant 0 : index
    %10 = vector.load %arg3[%c0_3, %c0_4] : memref<1x128xf32, #tpu.memory_space<vmem>>, vector<1x128xf32>
    %11 = vector.broadcast %10 : vector<1x128xf32> to vector<72x128xf32>
    %12 = arith.addf %9, %11 : vector<72x128xf32>
    %cst_5 = arith.constant 0.000000e+00 : f32
    %13 = vector.broadcast %cst_5 : f32 to vector<72x128xf32>
    %14 = arith.maximumf %12, %13 : vector<72x128xf32>
    %15 = arith.truncf %14 : vector<72x128xf32> to vector<72x128xbf16>
    %c0_6 = arith.constant 0 : index
    %c0_7 = arith.constant 0 : index
    %16 = vector.load %arg4[%c0_6, %c0_7] : memref<128x64xbf16, #tpu.memory_space<vmem>>, vector<128x64xbf16>
    %cst_8 = arith.constant dense<0.000000e+00> : vector<72x64xf32>
    %17 = tpu.matmul %15, %16, %cst_8 {dimension_numbers = #tpu.dot_dimension_numbers<[1], [0], [0], [1], [0, 0, 1, 1], [], []>} : vector<72x128xbf16>, vector<128x64xbf16>, vector<72x64xf32> -> vector<72x64xf32>
    %c0_9 = arith.constant 0 : index
    %c0_10 = arith.constant 0 : index
    %18 = vector.load %arg5[%c0_9, %c0_10] : memref<1x64xf32, #tpu.memory_space<vmem>>, vector<1x64xf32>
    %19 = vector.broadcast %18 : vector<1x64xf32> to vector<72x64xf32>
    %20 = arith.addf %17, %19 : vector<72x64xf32>
    %cst_11 = arith.constant 0.000000e+00 : f32
    %21 = vector.broadcast %cst_11 : f32 to vector<72x64xf32>
    %22 = arith.maximumf %20, %21 : vector<72x64xf32>
    %c0_12 = arith.constant 0 : index
    %c0_13 = arith.constant 0 : index
    %23 = vector.load %arg6[%c0_12, %c0_13] : memref<72x64xf32, #tpu.memory_space<vmem>>, vector<72x64xf32>
    tpu.vector_store %arg6[%c0_12, %c0_13], %22 {strides = array<i32>} : memref<72x64xf32, #tpu.memory_space<vmem>>, vector<72x64xf32>,
    return
  }
  func.func @transform_0(%arg0: i32) -> (i32, i32) {
    %c0_i32 = arith.constant 0 : i32
    %c0_i32_0 = arith.constant 0 : i32
    return %arg0, %c0_i32 : i32, i32
  }
  func.func @transform_1(%arg0: i32) -> (i32, i32) {
    %c0_i32 = arith.constant 0 : i32
    %c0_i32_0 = arith.constant 0 : i32
    %c0_i32_1 = arith.constant 0 : i32
    return %c0_i32, %c0_i32_0 : i32, i32
  }
  func.func @transform_2(%arg0: i32) -> (i32, i32) {
    %c0_i32 = arith.constant 0 : i32
    %c0_i32_0 = arith.constant 0 : i32
    %c0_i32_1 = arith.constant 0 : i32
    return %c0_i32, %c0_i32_0 : i32, i32
  }
  func.func @transform_3(%arg0: i32) -> (i32, i32) {
    %c0_i32 = arith.constant 0 : i32
    %c0_i32_0 = arith.constant 0 : i32
    %c0_i32_1 = arith.constant 0 : i32
    return %c0_i32, %c0_i32_0 : i32, i32
  }
  func.func @transform_4(%arg0: i32) -> (i32, i32) {
    %c0_i32 = arith.constant 0 : i32
    %c0_i32_0 = arith.constant 0 : i32
    %c0_i32_1 = arith.constant 0 : i32
    return %c0_i32, %c0_i32_0 : i32, i32
  }
  func.func @transform_5(%arg0: i32) -> (i32, i32) {
    %c0_i32 = arith.constant 0 : i32
    %c0_i32_0 = arith.constant 0 : i32
    return %arg0, %c0_i32 : i32, i32
  }
}

</mosaic_0001>

<bundles_post_ra>
// kernel: tpu_custom_call.1
= control target key start
LH: loop header
LB: loop body
LE: loop exit
PB: predicated region body
PF: predicated region fallthrough
CT: control target
= control target key end

     0   :  { %10 = vsyncpa [#allocation3], 0  ;;  %s2258_s18 = smov 0   ;;  %s2677_s0 = inlined_call_operand.vmem [shape: s32[288,1], index: 0, kind: input, shape index: {}]   ;;  %s2678_s1 = inlined_call_operand.hbm [shape: bf16[1024,128], index: 1, kind: input, shape index: {}]   ;;  %s2679_s2 = inlined_call_operand.vmem [shape: f32[1,128], index: 2, kind: input, shape index: {}]   ;;  %s2680_s3 = inlined_call_operand.vmem [shape: bf16[128,64], index: 3, kind: input, shape index: {}]   ;;  %s2681_s4 = inlined_call_operand.vmem [shape: f32[1,64], index: 4, kind: input, shape index: {}]   ;;  %s2682_s5 = inlined_call_operand.vmem [shape: f32[288,64], index: 5, kind: output, shape index: {}]  }
   0x1 LB: > { %s1596_s19 = sadd.s32 4294967295, %s2219_s18   ;;  %p1598_p0 = scmp.ge.s32.totalorder %s2219_s18, 1  ;;  %s2219_s18 = sphi %s2258_s18, %s16_s18  }
   0x2   : > { %p157_p1 = scmp.lt.s32.totalorder %s2219_s18, 5  ;;  %s2221_s20 = smov [#allocation2]  }
   0x3   : > { %s169_s21 = sshll.u32 %s2221_s20, 4  ;;  %p2272_p3 = scmp.eq.s32.totalorder %s1596_s19, 0  ;;  %s170_s21 = int_to_ptr.vmem [resolvable:$true] %s169_s21 }
   0x4   : > { %p2266_p2 = pnand %p1598_p0, %p157_p1  ;;  %s2181_s27 = scalar_lea.hbm %s2678_s1, 8192 }
   0x5   : > { %s2687_s23 = scalar_select %p2272_p3, 1, 0 }
   0x6   : > { %s2686_s22 = scalar_select %p2266_p2, 1, 0 }
   0x7   : > { %p2086_p4 = pneg %p2266_p2  ;;  %p2182_p6 = scmp.ne.s32.totalorder %s2678_s1, %s2181_s27 }
   0x8   : > { %p2188_p10 = scmp.lt.u32.totalorder %s2181_s27, %s2678_s1 }
   0x9   : > { %p2280_p5 = pnand %p2272_p3, %p2086_p4 }
   0xb   : > { %p2183_p7 = pneg %p2280_p5 }
   0xd   : > { %p2184_p8 = pnand %p2183_p7, %p2182_p6 }
   0xf   : > { %p2185_p9 = pneg %p2184_p8 }
  0x11   : > { %p2190_p11 = pnand %p2188_p10, %p2185_p9 }
  0x13   : > { %2193 = shalt.err (!%p2190_p11)
}
  0x14   : > { %s2194_s7 = scalar_lea.vmem %s170_s21, 8192  ;;  %p2202_p1 = scmp.lt.s32.totalorder %s170_s21, %s170_s21 }
  0x15   : > { %p2195_p12 = scmp.ne.s32.totalorder %s170_s21, %s2194_s7  ;;  %p2203_p4 = scmp.lt.s32.totalorder %s2194_s7, %s2194_s7 }
  0x17   : > { %p2197_p13 = pnand %p2195_p12, %p2183_p7  ;;  %p2204_p3 = por %p2203_p4, %p2202_p1 }
  0x19   : > { %p2198_p0 = pneg %p2197_p13 }
  0x1b   : > { %p2205_p2 = pnand %p2204_p3, %p2198_p0 }
  0x1d   : > { %2208 = shalt.err (!%p2205_p2)
}
  0x1e   : > { %s2222_s8 = smov 64   ;;  %s2223_s9 = smov 4  }
  0x1f   : > { %2089 = dma.hbm_to_vmem [thread:$0]  (!%p2280_p5), %s2678_s1, 8192, %s170_s21, [#allocation3], %s2222_s8, %s2222_s8, %s2223_s9  }
  0x20   : > { %p2689_p6 = scmp.ne.s32.totalorder %s2686_s22, 0 }
  0x21   : > { %p2690_p8 = scmp.ne.s32.totalorder (!%p2689_p6), %s2687_s23, 0 }
  0x22   : > { %203 = sbr.rel (%p2689_p6) target bundleno = 700 (0x2bc), region = 40 }
  0x29   : > { %2214 = dma.done.wait (%p2690_p8), [#allocation3], 8192  }
  0x2a   : > { %2216 = vsyncadd (%p2690_p8), [#allocation3], 4294959104  ;;  %s231_s12 = smul.u32 9, %s1596_s19  ;;  %v2224_v0 = vmov 0   ;;  %v2109_v1 = vld [vmem:[#allocation2 + $0x40] sm:$0xff]   ;;  %v2113_v11 = vld [vmem:[#allocation2 + $0x48] sm:$0xff]   ;;  %v253_v44 = vlaneseq }
  0x2b   : > { %2108 = vset.pattern.permute.xlu1 %v2224_v0  ;;  %2107 = vset.pattern.permute.xlu0 %v2224_v0  ;;  %v2110_v6 = vld [vmem:[#allocation2] sm:$0xff]   ;;  %v2114_v12 = vld [vmem:[#allocation2 + $0x8] sm:$0xff]   ;;  %v2117_v17 = vld [vmem:[#allocation2 + $0x50] sm:$0xff]   ;;  %v2225_v54 = vmov 1.0|1.0  }
  0x2c   : > { %p232_p2 = scmp.lt.s32.totalorder %s231_s12, 35  ;;  %1833 = vmatprep.subr.bf16.mxu0 %v2109_v1  ;;  %v2111_v9 = vld [vmem:[#allocation2 + $0xc0] sm:$0xff]   ;;  %v2115_v15 = vld [vmem:[#allocation2 + $0xc8] sm:$0xff]   ;;  %v2118_v18 = vld [vmem:[#allocation2 + $0x10] sm:$0xff]   ;;  %v2327_v45 = vand.u32 127, %v253_v44 }
  0x2d   : > { %v2112_v10 = vld [vmem:[#allocation2 + $0x80] sm:$0xff]   ;;  %1834 = vmatpush3.bf16.msra.mxu0 %v2110_v6  ;;  %1879 = vmatprep.subr.bf16.mxu1 %v2111_v9  ;;  %v2116_v16 = vld [vmem:[#allocation2 + $0x88] sm:$0xff]   ;;  %v2119_v20 = vld [vmem:[#allocation2 + $0xd0] sm:$0xff]  }
  0x2e   : > { %s2692_s12 = smov (!%p232_p2, %s231_s12), 35  ;;  %1880 = vmatpush3.bf16.msra.mxu1 %v2112_v10  ;;  %1835 = vmatprep.subr.bf16.mxu0 %v2113_v11  ;;  %v2120_v21 = vld [vmem:[#allocation2 + $0x90] sm:$0xff]   ;;  %v2121_v22 = vld [vmem:[#allocation2 + $0x58] sm:$0xff]   ;;  %v2125_v26 = vld [vmem:[#allocation2 + $0x60] sm:$0xff]   ;;  %v2334_v48 = vadd.s32 128, %v2327_v45  ;;  %v2337_v49 = vadd.s32 384, %v2327_v45 }
  0x2f   : > { %s1603_s13 = sshll.u32 %s2692_s12, 3  ;;  %1881 = vmatprep.subr.bf16.mxu1 %v2115_v15  ;;  %v2122_v23 = vld [vmem:[#allocation2 + $0x18] sm:$0xff]   ;;  %v2126_v27 = vld [vmem:[#allocation2 + $0x20] sm:$0xff]   ;;  %v2129_v30 = vld [vmem:[#allocation2 + $0x68] sm:$0xff]   ;;  %v2342_v51 = vadd.s32 256, %v2327_v45 }
  0x30   : > { %s2316_s16 = scalar_lea.vmem %s2677_s0, %s1603_s13  ;;  %v2123_v24 = vld [vmem:[#allocation2 + $0xd8] sm:$0xff]   ;;  %v2127_v28 = vld [vmem:[#allocation2 + $0xe0] sm:$0xff]   ;;  %v2130_v31 = vld [vmem:[#allocation2 + $0x28] sm:$0xff]   ;;  %s2654_s17 = scalar_lea.vmem %s2682_s5, %s1603_s13 }
  0x31   : > { %v246_v2 = vld [vmem:[%s2316_s16 + $0x10] sm:$0xff]  ;;  %v244_v3 = vld [vmem:[%s2316_s16] sm:$0xff]  ;;  %v247_v4 = vld [vmem:[%s2316_s16 + $0x18] sm:$0xff]  ;;  %1836 = vmatpush3.bf16.msra.mxu0 %v2114_v12 }
  0x32   : > { %269 = vperm.xlu1 %2108, %v246_v2   ;;  %263 = vperm.xlu0 %2107, %v244_v3   ;;  %v245_v5 = vld [vmem:[%s2316_s16 + $0x8] sm:$0xff]  ;;  %v248_v8 = vld [vmem:[%s2316_s16 + $0x20] sm:$0xff]  ;;  %v251_v13 = vld [vmem:[%s2316_s16 + $0x38] sm:$0xff] }
  0x33   : > { %v249_v7 = vld [vmem:[%s2316_s16 + $0x28] sm:$0xff]  ;;  %v250_v14 = vld [vmem:[%s2316_s16 + $0x30] sm:$0xff]  ;;  %1882 = vmatpush3.bf16.msra.mxu1 %v2116_v16  ;;  %v252_v19 = vld [vmem:[%s2316_s16 + $0x40] sm:$0xff]  ;;  %1837 = vmatprep.subr.bf16.mxu0 %v2117_v17 }
  0x34   : > { %1883 = vmatprep.subr.bf16.mxu1 %v2119_v20  ;;  %v2124_v25 = vld [vmem:[#allocation2 + $0x98] sm:$0xff]   ;;  %v2128_v29 = vld [vmem:[#allocation2 + $0xa0] sm:$0xff]   ;;  %v2131_v32 = vld [vmem:[#allocation2 + $0xe8] sm:$0xff]  }
  0x35   : > { %1838 = vmatpush3.bf16.msra.mxu0 %v2118_v18  ;;  %v2132_v33 = vld [vmem:[#allocation2 + $0xa8] sm:$0xff]   ;;  %v2133_v34 = vld [vmem:[#allocation2 + $0x70] sm:$0xff]   ;;  %v2137_v38 = vld [vmem:[#allocation2 + $0x78] sm:$0xff]  }
  0x36   : > { %272 = vperm.xlu1 %2108, %v247_v4   ;;  %266 = vperm.xlu0 %2107, %v245_v5   ;;  %v2134_v35 = vld [vmem:[#allocation2 + $0x30] sm:$0xff]   ;;  %v2138_v39 = vld [vmem:[#allocation2 + $0x38] sm:$0xff]   ;;  %v2141_v42 = vld [vmem:[#allocation2 + $0x140] sm:$0xff]  }
  0x37   : > { %1884 = vmatpush3.bf16.msra.mxu1 %v2120_v21  ;;  %1839 = vmatprep.subr.bf16.mxu0 %v2121_v22  ;;  %v2135_v36 = vld [vmem:[#allocation2 + $0xf0] sm:$0xff]   ;;  %v2139_v40 = vld [vmem:[#allocation2 + $0xf8] sm:$0xff]   ;;  %v2143_v43 = vld [vmem:[#allocation2 + $0x1c0] sm:$0xff]  }
  0x38   : > { %1885 = vmatprep.subr.bf16.mxu1 %v2123_v24  ;;  %v2136_v37 = vld [vmem:[#allocation2 + $0xb0] sm:$0xff]   ;;  %v2140_v41 = vld [vmem:[#allocation2 + $0xb8] sm:$0xff]   ;;  %v2142_v53 = vld [vmem:[#allocation2 + $0x100] sm:$0xff]   ;;  %v2448_v24 = vadd.s32 640, %v2327_v45 }
  0x39   : > { %1840 = vmatpush3.bf16.msra.mxu0 %v2122_v23  ;;  %v2144_v55 = vld [vmem:[#allocation2 + $0x180] sm:$0xff]   ;;  %v2145_v56 = vld [vmem:[#allocation2 + $0x148] sm:$0xff]   ;;  %v2149_v62 = vld [vmem:[#allocation2 + $0x150] sm:$0xff]  }
  0x3a   : > { %278 = vperm.xlu1 %2108, %v249_v7   ;;  %275 = vperm.xlu0 %2107, %v248_v8   ;;  %v2147_v57 = vld [vmem:[#allocation2 + $0x1c8] sm:$0xff]   ;;  %v2151_v63 = vld [vmem:[#allocation2 + $0x1d0] sm:$0xff]   ;;  %v2153_v2 = vld [vmem:[#allocation2 + $0x158] sm:$0xff]  }
  0x3b   : > { %1886 = vmatpush3.bf16.msra.mxu1 %v2124_v25  ;;  %1841 = vmatprep.subr.bf16.mxu0 %v2125_v26  ;;  %v2146_v58 = vld [vmem:[#allocation2 + $0x108] sm:$0xff]   ;;  %v2150_v0 = vld [vmem:[#allocation2 + $0x110] sm:$0xff]   ;;  %v2155_v3 = vld [vmem:[#allocation2 + $0x1d8] sm:$0xff]   ;;  %v2453_v26 = vadd.s32 896, %v2327_v45 }
  0x3c   : > { %1887 = vmatprep.subr.bf16.mxu1 %v2127_v28  ;;  %v2148_v61 = vld [vmem:[#allocation2 + $0x188] sm:$0xff]   ;;  %v2152_v1 = vld [vmem:[#allocation2 + $0x190] sm:$0xff]   ;;  %v2154_v6 = vld [vmem:[#allocation2 + $0x118] sm:$0xff]   ;;  %v2471_v28 = vadd.s32 768, %v2327_v45 }
  0x3d   : > { %1842 = vmatpush3.bf16.msra.mxu0 %v2126_v27  ;;  %v2156_v7 = vld [vmem:[#allocation2 + $0x198] sm:$0xff]   ;;  %v2157_v8 = vld [vmem:[#allocation2 + $0x160] sm:$0xff]   ;;  %v2161_v12 = vld [vmem:[#allocation2 + $0x168] sm:$0xff]   ;;  %v2467_v27 = vadd.s32 512, %v2327_v45 }
  0x3e   : > { %284 = vperm.xlu1 %2108, %v251_v13   ;;  %281 = vperm.xlu0 %2107, %v250_v14   ;;  %v2159_v9 = vld [vmem:[#allocation2 + $0x1e0] sm:$0xff]   ;;  %v2163_v13 = vld [vmem:[#allocation2 + $0x1e8] sm:$0xff]   ;;  %v2165_v17 = vld [vmem:[#allocation2 + $0x170] sm:$0xff]  }
  0x3f   : > { %1888 = vmatpush3.bf16.msra.mxu1 %v2128_v29  ;;  %1843 = vmatprep.subr.bf16.mxu0 %v2129_v30  ;;  %v2158_v10 = vld [vmem:[#allocation2 + $0x120] sm:$0xff]   ;;  %v2162_v15 = vld [vmem:[#allocation2 + $0x128] sm:$0xff]   ;;  %v2167_v18 = vld [vmem:[#allocation2 + $0x1f0] sm:$0xff]   ;;  %v2226_v30 = vmov 0.0  }
  0x40   : > { %1889 = vmatprep.subr.bf16.mxu1 %v2131_v32  ;;  %v2160_v11 = vld [vmem:[#allocation2 + $0x1a0] sm:$0xff]   ;;  %v2164_v16 = vld [vmem:[#allocation2 + $0x1a8] sm:$0xff]   ;;  %v2168_v20 = vld [vmem:[#allocation2 + $0x1b0] sm:$0xff]  }
  0x41   : > { %1844 = vmatpush3.bf16.msra.mxu0 %v2130_v31  ;;  %v2169_v21 = vld [vmem:[#allocation2 + $0x178] sm:$0xff]   ;;  %v2173_v29 = vld [vmem:[%s2680_s3] sm:$0xff]   ;;  %v2174_v31 = vld [vmem:[%s2680_s3 + $0x8] sm:$0xff]  }
  0x42   : > { %287 = vperm.xlu0 %2107, %v252_v19   ;;  %1845 = vmatprep.subr.bf16.mxu0 %v2133_v34  ;;  %v2166_v19 = vld [vmem:[#allocation2 + $0x130] sm:$0xff]   ;;  %v2171_v22 = vld [vmem:[#allocation2 + $0x1f8] sm:$0xff]   ;;  %v2177_v34 = vld [vmem:[%s2680_s3 + $0x20] sm:$0xff]  }
  0x43   : > { %1890 = vmatpush3.bf16.msra.mxu1 %v2132_v33  ;;  %v2170_v23 = vld [vmem:[#allocation2 + $0x138] sm:$0xff]   ;;  %v2175_v32 = vld [vmem:[%s2680_s3 + $0x10] sm:$0xff]  }
  0x44   : > { %1891 = vmatprep.subr.bf16.mxu1 %v2135_v36  ;;  %v2172_v25 = vld [vmem:[#allocation2 + $0x1b8] sm:$0xff]   ;;  %v2179_v36 = vld [vmem:[%s2680_s3 + $0x30] sm:$0xff]  }
  0x45   : > { %1846 = vmatpush3.bf16.msra.mxu0 %v2134_v35  ;;  %v2176_v33 = vld [vmem:[%s2680_s3 + $0x18] sm:$0xff]   ;;  %v2178_v35 = vld [vmem:[%s2680_s3 + $0x28] sm:$0xff]  }
  0x46   : > { %1847 = vmatprep.subr.bf16.mxu0 %v2137_v38 }
  0x47   : > { %1892 = vmatpush3.bf16.msra.mxu1 %v2136_v37  ;;  %v2180_v37 = vld [vmem:[%s2680_s3 + $0x38] sm:$0xff]  }
  0x48   : > { %1893 = vmatprep.subr.bf16.mxu1 %v2139_v40  ;;  %v2602_v40 = vld [vmem:[%s2679_s2] ss:$0 sm:$0xff] }
  0x49   : > { %1848 = vmatpush3.bf16.msra.mxu0 %v2138_v39 }
  0x4a   : > { %1925 = vmatprep.subr.bf16.mxu0 %v2141_v42 }
  0x4b   : > { %1894 = vmatpush3.bf16.msra.mxu1 %v2140_v41 }
  0x4c   : > { %1971 = vmatprep.subr.bf16.mxu1 %v2143_v43 }
  0xb1   : > { %v2329_v46 = vpop.permute.xlu1 %269  ;;  %v2331_v47 = vpop.permute.xlu0 %263 }
  0xb2   : > { %vm290_vm0 = vcmp.eq.s32.totalorder %v2331_v47, %v2334_v48  ;;  %vm292_vm5 = vcmp.eq.s32.totalorder %v2331_v47, %v2337_v49  ;;  %vm289_vm8 = vcmp.eq.s32.totalorder %v2331_v47, %v2327_v45  ;;  %vm306_vm9 = vcmp.eq.s32.totalorder %v2329_v46, %v2334_v48 }
  0xb3   : > { %vm291_vm12 = vcmp.eq.s32.totalorder %v2331_v47, %v2342_v51  ;;  %vm308_vm13 = vcmp.eq.s32.totalorder %v2329_v46, %v2337_v49 }
  0xb5   : > { %v2339_v50 = vpop.permute.xlu0 %266  ;;  %v2344_v52 = vpop.permute.xlu1 %272 }
  0xb6   : > { %vm298_vm1 = vcmp.eq.s32.totalorder %v2339_v50, %v2334_v48  ;;  %vm300_vm2 = vcmp.eq.s32.totalorder %v2339_v50, %v2337_v49  ;;  %vm297_vm3 = vcmp.eq.s32.totalorder %v2339_v50, %v2327_v45  ;;  %vm299_vm6 = vcmp.eq.s32.totalorder %v2339_v50, %v2342_v51 }
  0xb7   : > { %vm1742_vm4 = vmpackc.low %vm298_vm1, %vm290_vm0  ;;  %vm314_vm10 = vcmp.eq.s32.totalorder %v2344_v52, %v2334_v48  ;;  %vm316_vm14 = vcmp.eq.s32.totalorder %v2344_v52, %v2337_v49 }
  0xb8   : > { %1743 = vmatprep.mubr.msk.bf16.mxu0 %vm1742_vm4, %v2225_v54  ;;  %vm1762_vm7 = vmpackc.low %vm300_vm2, %vm292_vm5  ;;  %vm305_vm2 = vcmp.eq.s32.totalorder %v2329_v46, %v2327_v45  ;;  %vm307_vm4 = vcmp.eq.s32.totalorder %v2329_v46, %v2342_v51  ;;  %vm315_vm5 = vcmp.eq.s32.totalorder %v2344_v52, %v2342_v51 }
  0xb9   : > { %1763 = vmatprep.mubr.msk.bf16.mxu1 %vm1762_vm7, %v2225_v54  ;;  %vm1744_vm11 = vmpackc.low %vm297_vm3, %vm289_vm8  ;;  %v2377_v59 = vpop.permute.xlu1 %278  ;;  %v2379_v60 = vpop.permute.xlu0 %275  ;;  %vm313_vm3 = vcmp.eq.s32.totalorder %v2344_v52, %v2327_v45 }
  0xba   : > { %1745 = vmatmul.mubr.msk.bf16.vlgmr.msra.gmra.mrb[0].mxu0 %vm1744_vm11, %v2225_v54  ;;  %vm1764_vm15 = vmpackc.low %vm299_vm6, %vm291_vm12  ;;  %vm322_vm6 = vcmp.eq.s32.totalorder %v2379_v60, %v2334_v48  ;;  %vm330_vm7 = vcmp.eq.s32.totalorder %v2377_v59, %v2334_v48 }
  0xbb   : > { %1765 = vmatmul.mubr.msk.bf16.vlgmr.msra.gmra.mrb[0].mxu1 %vm1764_vm15, %v2225_v54  ;;  %1926 = vmatpush3.bf16.msra.mxu0 %v2142_v53  ;;  %vm1746_vm0 = vmpackc.low %vm314_vm10, %vm306_vm9  ;;  %vm324_vm9 = vcmp.eq.s32.totalorder %v2379_v60, %v2337_v49  ;;  %vm332_vm10 = vcmp.eq.s32.totalorder %v2377_v59, %v2337_v49  ;;  %vm329_vm15 = vcmp.eq.s32.totalorder %v2377_v59, %v2327_v45 }
  0xbc   : > { %1972 = vmatpush3.bf16.msra.mxu1 %v2144_v55  ;;  %1747 = vmatprep.mubr.msk.bf16.mxu0 %vm1746_vm0, %v2225_v54  ;;  %vm1766_vm1 = vmpackc.low %vm316_vm14, %vm308_vm13  ;;  %vm321_vm14 = vcmp.eq.s32.totalorder %v2379_v60, %v2327_v45  ;;  %vm323_vm0 = vcmp.eq.s32.totalorder %v2379_v60, %v2342_v51 }
  0xbd   : > { %1767 = vmatprep.mubr.msk.bf16.mxu1 %vm1766_vm1, %v2225_v54  ;;  %1927 = vmatprep.subr.bf16.mxu0 %v2145_v56  ;;  %vm1748_vm8 = vmpackc.low %vm313_vm3, %vm305_vm2  ;;  %v2402_v4 = vpop.permute.xlu1 %284  ;;  %v2404_v5 = vpop.permute.xlu0 %281  ;;  %vm331_vm1 = vcmp.eq.s32.totalorder %v2377_v59, %v2342_v51 }
  0xbe   : > { %1973 = vmatprep.subr.bf16.mxu1 %v2147_v57  ;;  %vm1768_vm11 = vmpackc.low %vm315_vm5, %vm307_vm4  ;;  %vm338_vm2 = vcmp.eq.s32.totalorder %v2404_v5, %v2334_v48  ;;  %vm346_vm3 = vcmp.eq.s32.totalorder %v2402_v4, %v2334_v48  ;;  %vm340_vm5 = vcmp.eq.s32.totalorder %v2404_v5, %v2337_v49 }
  0xbf   : > { %1928 = vmatpush3.bf16.msra.mxu0 %v2146_v58  ;;  %vm1750_vm12 = vmpackc.low %vm330_vm7, %vm322_vm6  ;;  %vm348_vm6 = vcmp.eq.s32.totalorder %v2402_v4, %v2337_v49 }
  0xc0   : > { %1974 = vmatpush3.bf16.msra.mxu1 %v2148_v61  ;;  %1929 = vmatprep.subr.bf16.mxu0 %v2149_v62  ;;  %vm1770_vm13 = vmpackc.low %vm332_vm10, %vm324_vm9  ;;  %vm337_vm10 = vcmp.eq.s32.totalorder %v2404_v5, %v2327_v45 }
  0xc1   : > { %1975 = vmatprep.subr.bf16.mxu1 %v2151_v63  ;;  %vm1752_vm4 = vmpackc.low %vm329_vm15, %vm321_vm14  ;;  %v2426_v14 = vpop.permute.xlu0 %287 }
  0xc2   : > { %1749 = vmatmul.mubr.msk.bf16.gmra.mrb[4].mxu0 %vm1748_vm8, %v2225_v54  ;;  %vm1772_vm7 = vmpackc.low %vm331_vm1, %vm323_vm0  ;;  %vm354_vm14 = vcmp.eq.s32.totalorder %v2426_v14, %v2334_v48  ;;  %vm356_vm0 = vcmp.eq.s32.totalorder %v2426_v14, %v2337_v49 }
  0xc3   : > { %1769 = vmatmul.mubr.msk.bf16.gmra.mrb[4].mxu1 %vm1768_vm11, %v2225_v54  ;;  %1751 = vmatprep.mubr.msk.bf16.mxu0 %vm1750_vm12, %v2225_v54  ;;  %vm1754_vm8 = vmpackc.low %vm346_vm3, %vm338_vm2  ;;  %vm345_vm11 = vcmp.eq.s32.totalorder %v2402_v4, %v2327_v45  ;;  %vm339_vm12 = vcmp.eq.s32.totalorder %v2404_v5, %v2342_v51 }
  0xc4   : > { %1771 = vmatprep.mubr.msk.bf16.mxu1 %vm1770_vm13, %v2225_v54  ;;  %1930 = vmatpush3.bf16.msra.mxu0 %v2150_v0  ;;  %vm1774_vm9 = vmpackc.low %vm348_vm6, %vm340_vm5  ;;  %vm347_vm13 = vcmp.eq.s32.totalorder %v2402_v4, %v2342_v51  ;;  %vm355_vm5 = vcmp.eq.s32.totalorder %v2426_v14, %v2342_v51  ;;  %vm302_vm6 = vcmp.eq.s32.totalorder %v2339_v50, %v2448_v24 }
  0xc5   : > { %1976 = vmatpush3.bf16.msra.mxu1 %v2152_v1  ;;  %1931 = vmatprep.subr.bf16.mxu0 %v2153_v2  ;;  %vm1756_vm15 = vmpackc.low %vm345_vm11, %vm337_vm10  ;;  %vm294_vm10 = vcmp.eq.s32.totalorder %v2331_v47, %v2448_v24 }
  0xc6   : > { %1977 = vmatprep.subr.bf16.mxu1 %v2155_v3  ;;  %vm1776_vm1 = vmpackc.low %vm347_vm13, %vm339_vm12  ;;  %vm296_vm12 = vcmp.eq.s32.totalorder %v2331_v47, %v2453_v26 }
  0xc7   : > { %vm1758_vm2 = vmpackc.low %vm354_vm14, %vm354_vm14  ;;  %vm301_vm14 = vcmp.eq.s32.totalorder %v2339_v50, %v2467_v27 }
  0xc8   : > { %1932 = vmatpush3.bf16.msra.mxu0 %v2154_v6  ;;  %vm1778_vm3 = vmpackc.low %vm356_vm0, %vm356_vm0  ;;  %vm293_vm0 = vcmp.eq.s32.totalorder %v2331_v47, %v2467_v27 }
  0xc9   : > { %1978 = vmatpush3.bf16.msra.mxu1 %v2156_v7  ;;  %1933 = vmatprep.subr.bf16.mxu0 %v2157_v8  ;;  %vm1782_vm11 = vmpackc.low %vm302_vm6, %vm294_vm10  ;;  %vm320_vm6 = vcmp.eq.s32.totalorder %v2344_v52, %v2453_v26  ;;  %vm309_vm10 = vcmp.eq.s32.totalorder %v2329_v46, %v2467_v27 }
  0xca   : > { %1753 = vmatmul.mubr.msk.bf16.gmra.mrb[8].mxu0 %vm1752_vm4, %v2225_v54  ;;  %1979 = vmatprep.subr.bf16.mxu1 %v2159_v9  ;;  %vm353_vm4 = vcmp.eq.s32.totalorder %v2426_v14, %v2327_v45 }
  0xcb   : > { %1773 = vmatmul.mubr.msk.bf16.gmra.mrb[8].mxu1 %vm1772_vm7, %v2225_v54  ;;  %1755 = vmatprep.mubr.msk.bf16.mxu0 %vm1754_vm8, %v2225_v54  ;;  %vm1760_vm7 = vmpackc.low %vm353_vm4, %vm353_vm4  ;;  %vm304_vm8 = vcmp.eq.s32.totalorder %v2339_v50, %v2453_v26  ;;  %vm295_vm4 = vcmp.eq.s32.totalorder %v2331_v47, %v2471_v28 }
  0xcc   : > { %1775 = vmatprep.mubr.msk.bf16.mxu1 %vm1774_vm9, %v2225_v54  ;;  %1934 = vmatpush3.bf16.msra.mxu0 %v2158_v10  ;;  %vm1780_vm9 = vmpackc.low %vm355_vm5, %vm355_vm5  ;;  %vm312_vm5 = vcmp.eq.s32.totalorder %v2329_v46, %v2453_v26 }
  0xcd   : > { %1980 = vmatpush3.bf16.msra.mxu1 %v2160_v11  ;;  %1935 = vmatprep.subr.bf16.mxu0 %v2161_v12  ;;  %vm1802_vm13 = vmpackc.low %vm304_vm8, %vm296_vm12  ;;  %vm311_vm12 = vcmp.eq.s32.totalorder %v2329_v46, %v2471_v28 }
  0xce   : > { %1981 = vmatprep.subr.bf16.mxu1 %v2163_v13 }
  0xd0   : > { %1936 = vmatpush3.bf16.msra.mxu0 %v2162_v15 }
  0xd1   : > { %1982 = vmatpush3.bf16.msra.mxu1 %v2164_v16  ;;  %1937 = vmatprep.subr.bf16.mxu0 %v2165_v17 }
  0xd2   : > { %1757 = vmatmul.mubr.msk.bf16.gmra.mrb[12].mxu0 %vm1756_vm15, %v2225_v54  ;;  %1983 = vmatprep.subr.bf16.mxu1 %v2167_v18  ;;  %vm303_vm15 = vcmp.eq.s32.totalorder %v2339_v50, %v2471_v28 }
  0xd3   : > { %1777 = vmatmul.mubr.msk.bf16.gmra.mrb[12].mxu1 %vm1776_vm1, %v2225_v54  ;;  %1759 = vmatprep.mubr.msk.bf16.mxu0 %vm1758_vm2, %v2225_v54  ;;  %vm310_vm1 = vcmp.eq.s32.totalorder %v2329_v46, %v2448_v24  ;;  %vm318_vm2 = vcmp.eq.s32.totalorder %v2344_v52, %v2448_v24 }
  0xd4   : > { %1779 = vmatprep.mubr.msk.bf16.mxu1 %vm1778_vm3, %v2225_v54  ;;  %1938 = vmatpush3.bf16.msra.mxu0 %v2166_v19  ;;  %vm1784_vm3 = vmpackc.low %vm301_vm14, %vm293_vm0  ;;  %vm326_vm14 = vcmp.eq.s32.totalorder %v2379_v60, %v2448_v24 }
  0xd5   : > { %1984 = vmatpush3.bf16.msra.mxu1 %v2168_v20  ;;  %1939 = vmatprep.subr.bf16.mxu0 %v2169_v21  ;;  %vm1786_vm8 = vmpackc.low %vm318_vm2, %vm310_vm1  ;;  %vm328_vm1 = vcmp.eq.s32.totalorder %v2379_v60, %v2453_v26  ;;  %vm336_vm2 = vcmp.eq.s32.totalorder %v2377_v59, %v2453_v26 }
  0xd6   : > { %1985 = vmatprep.subr.bf16.mxu1 %v2171_v22 }
  0xd8   : > { %1940 = vmatpush3.bf16.msra.mxu0 %v2170_v23 }
  0xd9   : > { %1986 = vmatpush3.bf16.msra.mxu1 %v2172_v25  ;;  %2030 = vmatprep.subr.bf16.mxu0 %v2226_v30 }
  0xda   : > { %1761 = vmatmul.mubr.msk.bf16.gmra.mrb[16].mxu0 %vm1760_vm7, %v2225_v54  ;;  %vm1804_vm7 = vmpackc.low %vm303_vm15, %vm295_vm4  ;;  %vm334_vm15 = vcmp.eq.s32.totalorder %v2377_v59, %v2448_v24  ;;  %2066 = vmatprep.subr.bf16.mxu1 %v2226_v30 }
  0xdb   : > { %1781 = vmatmul.mubr.msk.bf16.gmra.mrb[16].mxu1 %vm1780_vm9, %v2225_v54  ;;  %1783 = vmatprep.mubr.msk.bf16.mxu0 %vm1782_vm11, %v2225_v54  ;;  %vm1806_vm9 = vmpackc.low %vm320_vm6, %vm312_vm5  ;;  %vm317_vm11 = vcmp.eq.s32.totalorder %v2344_v52, %v2467_v27  ;;  %vm325_vm6 = vcmp.eq.s32.totalorder %v2379_v60, %v2467_v27 }
  0xdc   : > { %1803 = vmatprep.mubr.msk.bf16.mxu1 %vm1802_vm13, %v2225_v54  ;;  %vm319_vm13 = vcmp.eq.s32.totalorder %v2344_v52, %v2471_v28  ;;  %vm1788_vm0 = vmpackc.low %vm317_vm11, %vm309_vm10  ;;  %vm342_vm10 = vcmp.eq.s32.totalorder %v2404_v5, %v2448_v24  ;;  %vm350_vm11 = vcmp.eq.s32.totalorder %v2402_v4, %v2448_v24 }
  0xdd   : > { %vm1790_vm4 = vmpackc.low %vm334_vm15, %vm326_vm14  ;;  %vm352_vm14 = vcmp.eq.s32.totalorder %v2402_v4, %v2453_v26 }
  0xde   : > { %vm1810_vm5 = vmpackc.low %vm336_vm2, %vm328_vm1  ;;  %vm341_vm2 = vcmp.eq.s32.totalorder %v2404_v5, %v2467_v27 }
  0xe2   : > { %1785 = vmatmul.mubr.msk.bf16.vlgmr.msra.gmra.mrb[20].mxu0 %vm1784_vm3, %v2225_v54  ;;  %vm1808_vm3 = vmpackc.low %vm319_vm13, %vm311_vm12  ;;  %vm344_vm13 = vcmp.eq.s32.totalorder %v2404_v5, %v2453_v26 }
  0xe3   : > { %1805 = vmatmul.mubr.msk.bf16.vlgmr.msra.gmra.mrb[20].mxu1 %vm1804_vm7, %v2225_v54  ;;  %1787 = vmatprep.mubr.msk.bf16.mxu0 %vm1786_vm8, %v2225_v54  ;;  %vm333_vm7 = vcmp.eq.s32.totalorder %v2377_v59, %v2467_v27  ;;  %vm327_vm8 = vcmp.eq.s32.totalorder %v2379_v60, %v2471_v28  ;;  %vm1814_vm1 = vmpackc.low %vm352_vm14, %vm344_vm13  ;;  %vm359_vm13 = vcmp.eq.s32.totalorder %v2426_v14, %v2471_v28 }
  0xe4   : > { %1807 = vmatprep.mubr.msk.bf16.mxu1 %vm1806_vm9, %v2225_v54  ;;  %vm335_vm9 = vcmp.eq.s32.totalorder %v2377_v59, %v2471_v28  ;;  %vm1792_vm12 = vmpackc.low %vm333_vm7, %vm325_vm6  ;;  %vm358_vm6 = vcmp.eq.s32.totalorder %v2426_v14, %v2448_v24  ;;  %2031 = vmatpush3.bf16.msra.mxu0 %v2173_v29 }
  0xe5   : > { %vm1812_vm15 = vmpackc.low %vm335_vm9, %vm327_vm8  ;;  %vm360_vm8 = vcmp.eq.s32.totalorder %v2426_v14, %v2453_v26  ;;  %2074 = vmatpush3.bf16.msra.mxu1 %v2173_v29  ;;  %2032 = vmatprep.subr.bf16.mxu0 %v2226_v30 }
  0xe6   : > { %2067 = vmatprep.subr.bf16.mxu1 %v2226_v30 }
  0xe8   : > { %2033 = vmatpush3.bf16.msra.mxu0 %v2174_v31 }
  0xe9   : > { %2075 = vmatpush3.bf16.msra.mxu1 %v2174_v31  ;;  %2034 = vmatprep.subr.bf16.mxu0 %v2226_v30 }
  0xea   : > { %1789 = vmatmul.mubr.msk.bf16.gmra.mrb[24].mxu0 %vm1788_vm0, %v2225_v54  ;;  %vm1794_vm0 = vmpackc.low %vm350_vm11, %vm342_vm10  ;;  %2068 = vmatprep.subr.bf16.mxu1 %v2226_v30 }
  0xeb   : > { %1809 = vmatmul.mubr.msk.bf16.gmra.mrb[24].mxu1 %vm1808_vm3, %v2225_v54  ;;  %1791 = vmatprep.mubr.msk.bf16.mxu0 %vm1790_vm4, %v2225_v54  ;;  %vm349_vm3 = vcmp.eq.s32.totalorder %v2402_v4, %v2467_v27  ;;  %vm343_vm4 = vcmp.eq.s32.totalorder %v2404_v5, %v2471_v28  ;;  %vm1798_vm10 = vmpackc.low %vm358_vm6, %vm358_vm6 }
  0xec   : > { %1811 = vmatprep.mubr.msk.bf16.mxu1 %vm1810_vm5, %v2225_v54  ;;  %vm351_vm5 = vcmp.eq.s32.totalorder %v2402_v4, %v2471_v28  ;;  %vm1796_vm7 = vmpackc.low %vm349_vm3, %vm341_vm2  ;;  %2035 = vmatpush3.bf16.msra.mxu0 %v2175_v32 }
  0xed   : > { %vm1816_vm9 = vmpackc.low %vm351_vm5, %vm343_vm4  ;;  %2076 = vmatpush3.bf16.msra.mxu1 %v2175_v32  ;;  %2036 = vmatprep.subr.bf16.mxu0 %v2226_v30 }
  0xee   : > { %vm1818_vm11 = vmpackc.low %vm360_vm8, %vm360_vm8  ;;  %2069 = vmatprep.subr.bf16.mxu1 %v2226_v30 }
  0xf0   : > { %2037 = vmatpush3.bf16.msra.mxu0 %v2176_v33 }
  0xf1   : > { %2077 = vmatpush3.bf16.msra.mxu1 %v2176_v33  ;;  %2038 = vmatprep.subr.bf16.mxu0 %v2226_v30 }
  0xf2   : > { %1793 = vmatmul.mubr.msk.bf16.gmra.mrb[28].mxu0 %vm1792_vm12, %v2225_v54  ;;  %vm357_vm12 = vcmp.eq.s32.totalorder %v2426_v14, %v2467_v27  ;;  %2070 = vmatprep.subr.bf16.mxu1 %v2226_v30 }
  0xf3   : > { %1813 = vmatmul.mubr.msk.bf16.gmra.mrb[28].mxu1 %vm1812_vm15, %v2225_v54  ;;  %1795 = vmatprep.mubr.msk.bf16.mxu0 %vm1794_vm0, %v2225_v54  ;;  %vm1800_vm14 = vmpackc.low %vm357_vm12, %vm357_vm12  ;;  %vm2227_vm0 = vmmov 0  }
  0xf4   : > { %1815 = vmatprep.mubr.msk.bf16.mxu1 %vm1814_vm1, %v2225_v54  ;;  %vm1820_vm15 = vmpackc.low %vm359_vm13, %vm359_vm13  ;;  %2039 = vmatpush3.bf16.msra.mxu0 %v2177_v34  ;;  %vm1518_vm1 = vcmask 523264  }
  0xf5   : > { %2078 = vmatpush3.bf16.msra.mxu1 %v2177_v34  ;;  %2040 = vmatprep.subr.bf16.mxu0 %v2226_v30 }
  0xf6   : > { %2071 = vmatprep.subr.bf16.mxu1 %v2226_v30 }
  0xf8   : > { %2041 = vmatpush3.bf16.msra.mxu0 %v2178_v35 }
  0xf9   : > { %2079 = vmatpush3.bf16.msra.mxu1 %v2178_v35  ;;  %2042 = vmatprep.subr.bf16.mxu0 %v2226_v30 }
  0xfa   : > { %1797 = vmatmul.mubr.msk.bf16.gmra.mrb[32].mxu0 %vm1796_vm7, %v2225_v54  ;;  %2072 = vmatprep.subr.bf16.mxu1 %v2226_v30 }
  0xfb   : > { %1817 = vmatmul.mubr.msk.bf16.gmra.mrb[32].mxu1 %vm1816_vm9, %v2225_v54  ;;  %1799 = vmatprep.mubr.msk.bf16.mxu0 %vm1798_vm10, %v2225_v54 }
  0xfc   : > { %1819 = vmatprep.mubr.msk.bf16.mxu1 %vm1818_vm11, %v2225_v54  ;;  %2043 = vmatpush3.bf16.msra.mxu0 %v2179_v36 }
  0xfd   : > { %2080 = vmatpush3.bf16.msra.mxu1 %v2179_v36  ;;  %2044 = vmatprep.subr.bf16.mxu0 %v2226_v30 }
  0xfe   : > { %2073 = vmatprep.subr.bf16.mxu1 %v2226_v30 }
 0x100   : > { %2045 = vmatpush3.bf16.msra.mxu0 %v2180_v37 }
 0x101   : > { %2081 = vmatpush3.bf16.msra.mxu1 %v2180_v37 }
 0x102   : > { %1801 = vmatmul.mubr.msk.bf16.gmra.mrb[36].mxu0 %vm1800_vm14, %v2225_v54 }
 0x103   : > { %1821 = vmatmul.mubr.msk.bf16.gmra.mrb[36].mxu1 %vm1820_vm15, %v2225_v54  ;;  %2046 = vmatprep.mubr.msk.bf16.mxu0 %vm2227_vm0, %v2226_v30 }
 0x104   : > { %2058 = vmatprep.mubr.msk.bf16.mxu1 %vm2227_vm0, %v2226_v30 }
 0x18d   : > { %v1849_v38 = vpop.f32.mrb[0].mxu0 }
 0x18e   : > { %v1895_v39 = vpop.f32.mrb[0].mxu1  ;;  %v1850_v41 = vpop.f32.mrb[1].mxu0 }
 0x18f   : > { %v1851_v42 = vadd.f32 %v1850_v41, %v1849_v38  ;;  %v1896_v43 = vpop.f32.mrb[1].mxu1  ;;  %v1852_v44 = vpop.f32.mrb[2].mxu0 }
 0x190   : > { %v1897_v45 = vadd.f32 %v1896_v43, %v1895_v39  ;;  %v1898_v46 = vpop.f32.mrb[2].mxu1  ;;  %v1853_v47 = vpop.f32.mrb[3].mxu0 }
 0x191   : > { %v1099_v48 = vadd.f32 %v1851_v42, %v2602_v40  ;;  %v1854_v49 = vadd.f32 %v1853_v47, %v1852_v44  ;;  %v1899_v50 = vpop.f32.mrb[3].mxu1 }
 0x192   : > { %v1900_v51 = vadd.f32 %v1899_v50, %v1898_v46 }
 0x193   : > { %v2605_v52 = vadd.f32 %v1897_v45, %v1099_v48  ;;  %v1102_v53 = vadd.f32 %v1854_v49, %v2602_v40 }
 0x195   : > { %v2608_v54 = vadd.f32 %v1900_v51, %v1102_v53  ;;  %v1855_v55 = vpop.f32.mrb[4].mxu0 }
 0x196   : > { %v1901_v56 = vpop.f32.mrb[4].mxu1  ;;  %v1856_v57 = vpop.f32.mrb[5].mxu0 }
 0x197   : > { %v1857_v58 = vadd.f32 %v1856_v57, %v1855_v55  ;;  %v1902_v59 = vpop.f32.mrb[5].mxu1  ;;  %v1858_v60 = vpop.f32.mrb[6].mxu0 }
 0x198   : > { %v1903_v61 = vadd.f32 %v1902_v59, %v1901_v56  ;;  %v1904_v62 = vpop.f32.mrb[6].mxu1  ;;  %v1859_v63 = vpop.f32.mrb[7].mxu0 }
 0x199   : > { %v1107_v0 = vadd.f32 %v1857_v58, %v2602_v40  ;;  %v1860_v1 = vadd.f32 %v1859_v63, %v1858_v60  ;;  %v1905_v2 = vpop.f32.mrb[7].mxu1 }
 0x19a   : > { %v1906_v3 = vadd.f32 %v1905_v2, %v1904_v62 }
 0x19b   : > { %v2611_v4 = vadd.f32 %v1903_v61, %v1107_v0  ;;  %v1110_v5 = vadd.f32 %v1860_v1, %v2602_v40 }
 0x19d   : > { %v2614_v6 = vadd.f32 %v1906_v3, %v1110_v5  ;;  %v1861_v7 = vpop.f32.mrb[8].mxu0 }
 0x19e   : > { %v1907_v8 = vpop.f32.mrb[8].mxu1  ;;  %v1862_v9 = vpop.f32.mrb[9].mxu0 }
 0x19f   : > { %v1863_v10 = vadd.f32 %v1862_v9, %v1861_v7  ;;  %v1908_v11 = vpop.f32.mrb[9].mxu1  ;;  %v1864_v12 = vpop.f32.mrb[10].mxu0 }
 0x1a0   : > { %v1909_v13 = vadd.f32 %v1908_v11, %v1907_v8  ;;  %v1910_v14 = vpop.f32.mrb[10].mxu1  ;;  %v1865_v15 = vpop.f32.mrb[11].mxu0 }
 0x1a1   : > { %v1115_v16 = vadd.f32 %v1863_v10, %v2602_v40  ;;  %v1866_v17 = vadd.f32 %v1865_v15, %v1864_v12  ;;  %v1911_v18 = vpop.f32.mrb[11].mxu1 }
 0x1a2   : > { %v1912_v19 = vadd.f32 %v1911_v18, %v1910_v14 }
 0x1a3   : > { %v2617_v20 = vadd.f32 %v1909_v13, %v1115_v16  ;;  %v1118_v21 = vadd.f32 %v1866_v17, %v2602_v40 }
 0x1a5   : > { %v2620_v22 = vadd.f32 %v1912_v19, %v1118_v21  ;;  %v1867_v23 = vpop.f32.mrb[12].mxu0 }
 0x1a6   : > { %v1913_v24 = vpop.f32.mrb[12].mxu1  ;;  %v1868_v25 = vpop.f32.mrb[13].mxu0 }
 0x1a7   : > { %v1869_v26 = vadd.f32 %v1868_v25, %v1867_v23  ;;  %v1914_v27 = vpop.f32.mrb[13].mxu1  ;;  %v1870_v28 = vpop.f32.mrb[14].mxu0 }
 0x1a8   : > { %v1915_v29 = vadd.f32 %v1914_v27, %v1913_v24  ;;  %v1916_v31 = vpop.f32.mrb[14].mxu1  ;;  %v1871_v32 = vpop.f32.mrb[15].mxu0 }
 0x1a9   : > { %v1123_v33 = vadd.f32 %v1869_v26, %v2602_v40  ;;  %v1872_v34 = vadd.f32 %v1871_v32, %v1870_v28  ;;  %v1917_v35 = vpop.f32.mrb[15].mxu1 }
 0x1aa   : > { %v1918_v36 = vadd.f32 %v1917_v35, %v1916_v31 }
 0x1ab   : > { %v2623_v37 = vadd.f32 %v1915_v29, %v1123_v33  ;;  %v1126_v38 = vadd.f32 %v1872_v34, %v2602_v40 }
 0x1ad   : > { %v2626_v39 = vadd.f32 %v1918_v36, %v1126_v38  ;;  %v1873_v41 = vpop.f32.mrb[16].mxu0 }
 0x1ae   : > { %v1919_v42 = vpop.f32.mrb[16].mxu1  ;;  %v1874_v43 = vpop.f32.mrb[17].mxu0 }
 0x1af   : > { %v1875_v44 = vadd.f32 %v1874_v43, %v1873_v41  ;;  %v1920_v45 = vpop.f32.mrb[17].mxu1  ;;  %v1876_v46 = vpop.f32.mrb[18].mxu0 }
 0x1b0   : > { %v1921_v47 = vadd.f32 %v1920_v45, %v1919_v42  ;;  %v1922_v48 = vpop.f32.mrb[18].mxu1  ;;  %v1877_v49 = vpop.f32.mrb[19].mxu0 }
 0x1b1   : > { %v1131_v50 = vadd.f32 %v1875_v44, %v2602_v40  ;;  %v1923_v51 = vpop.f32.mrb[19].mxu1 }
 0x1b3   : > { %v2629_v53 = vadd.f32 %v1921_v47, %v1131_v50 }
 0x1b5   : > { %v1941_v55 = vpop.f32.mrb[20].mxu0 }
 0x1b6   : > { %v1987_v56 = vpop.f32.mrb[20].mxu1  ;;  %v1942_v57 = vpop.f32.mrb[21].mxu0 }
 0x1b7   : > { %v1943_v58 = vadd.f32 %v1942_v57, %v1941_v55  ;;  %v1988_v59 = vpop.f32.mrb[21].mxu1  ;;  %v1944_v60 = vpop.f32.mrb[22].mxu0 }
 0x1b8   : > { %v1989_v61 = vadd.f32 %v1988_v59, %v1987_v56  ;;  %v1990_v62 = vpop.f32.mrb[22].mxu1  ;;  %v1945_v63 = vpop.f32.mrb[23].mxu0 }
 0x1b9   : > { %v1243_v0 = vadd.f32 %v1943_v58, %v2605_v52  ;;  %v1946_v1 = vadd.f32 %v1945_v63, %v1944_v60  ;;  %v1991_v2 = vpop.f32.mrb[23].mxu1 }
 0x1ba   : > { %v1992_v3 = vadd.f32 %v1991_v2, %v1990_v62 }
 0x1bb   : > { %v1315_v5 = vadd.f32 %v1989_v61, %v1243_v0  ;;  %v1246_v40 = vadd.f32 %v1946_v1, %v2608_v54 }
 0x1bd   : > { %v1318_v7 = vadd.f32 %v1992_v3, %v1246_v40  ;;  %v1947_v8 = vpop.f32.mrb[24].mxu0  ;;  %v1352_v11 = vmax.f32 %v1315_v5, 0.0 }
 0x1be   : > { %v1993_v9 = vpop.f32.mrb[24].mxu1  ;;  %v1948_v10 = vpop.f32.mrb[25].mxu0 }
 0x1bf   : > { %v1353_v12 = vmax.f32 %v1318_v7, 0.0  ;;  %v1949_v13 = vadd.f32 %v1948_v10, %v1947_v8  ;;  %v1994_v14 = vpop.f32.mrb[25].mxu1  ;;  %v1950_v15 = vpop.f32.mrb[26].mxu0 }
 0x1c0   : > { %v1995_v16 = vadd.f32 %v1994_v14, %v1993_v9  ;;  %v1996_v17 = vpop.f32.mrb[26].mxu1  ;;  %v1951_v18 = vpop.f32.mrb[27].mxu0 }
 0x1c1   : > { %v1361_v19 = vpack.c.bf16 %v1353_v12, %v1352_v11  ;;  %v1251_v52 = vadd.f32 %v1949_v13, %v2611_v4  ;;  %v1952_v21 = vadd.f32 %v1951_v18, %v1950_v15  ;;  %v1997_v23 = vpop.f32.mrb[27].mxu1 }
 0x1c2   : > { %v1998_v24 = vadd.f32 %v1997_v23, %v1996_v17 }
 0x1c3   : > { %v1323_v25 = vadd.f32 %v1995_v16, %v1251_v52  ;;  %v1254_v54 = vadd.f32 %v1952_v21, %v2614_v6  ;;  %2047 = vmatmul.mubr.bf16.vlgmr.msra.gmra.mrb[40].mxu0 %v1361_v19  ;;  %v1822_v52 = vld [vmem:[%s2681_s4] ss:$0 sm:$0xff] }
 0x1c4   : > { %2050 = vmatprep.mubr.msk.bf16.mxu0 %vm2227_vm0, %v2226_v30 }
 0x1c5   : > { %v1326_v26 = vadd.f32 %v1998_v24, %v1254_v54  ;;  %v1953_v27 = vpop.f32.mrb[28].mxu0  ;;  %v1354_v31 = vmax.f32 %v1323_v25, 0.0 }
 0x1c6   : > { %v1999_v28 = vpop.f32.mrb[28].mxu1  ;;  %v1954_v29 = vpop.f32.mrb[29].mxu0 }
 0x1c7   : > { %v1355_v32 = vmax.f32 %v1326_v26, 0.0  ;;  %v1955_v33 = vadd.f32 %v1954_v29, %v1953_v27  ;;  %v2000_v34 = vpop.f32.mrb[29].mxu1  ;;  %v1956_v35 = vpop.f32.mrb[30].mxu0 }
 0x1c8   : > { %v2001_v4 = vadd.f32 %v2000_v34, %v1999_v28  ;;  %v2002_v36 = vpop.f32.mrb[30].mxu1  ;;  %v1957_v38 = vpop.f32.mrb[31].mxu0 }
 0x1c9   : > { %v1259_v41 = vadd.f32 %v1955_v33, %v2617_v20  ;;  %v1958_v42 = vadd.f32 %v1957_v38, %v1956_v35  ;;  %v2003_v6 = vpop.f32.mrb[31].mxu1  ;;  %v1362_v43 = vpack.c.bf16 %v1355_v32, %v1354_v31 }
 0x1ca   : > { %v2004_v44 = vadd.f32 %v2003_v6, %v2002_v36 }
 0x1cb   : > { %v1331_v45 = vadd.f32 %v2001_v4, %v1259_v41  ;;  %v1262_v46 = vadd.f32 %v1958_v42, %v2620_v22  ;;  %2051 = vmatmul.mubr.bf16.gmra.mrb[44].mxu0 %v1362_v43 }
 0x1cc   : > { %2054 = vmatprep.mubr.msk.bf16.mxu0 %vm2227_vm0, %v2226_v30 }
 0x1cd   : > { %v1334_v47 = vadd.f32 %v2004_v44, %v1262_v46  ;;  %v1959_v48 = vpop.f32.mrb[32].mxu0  ;;  %v1356_v51 = vmax.f32 %v1331_v45, 0.0 }
 0x1ce   : > { %v2005_v49 = vpop.f32.mrb[32].mxu1  ;;  %v1960_v50 = vpop.f32.mrb[33].mxu0 }
 0x1cf   : > { %v1357_v55 = vmax.f32 %v1334_v47, 0.0  ;;  %v1961_v56 = vadd.f32 %v1960_v50, %v1959_v48  ;;  %v2006_v57 = vpop.f32.mrb[33].mxu1  ;;  %v1962_v20 = vpop.f32.mrb[34].mxu0 }
 0x1d0   : > { %v2007_v58 = vadd.f32 %v2006_v57, %v2005_v49  ;;  %v2008_v59 = vpop.f32.mrb[34].mxu1  ;;  %v1963_v60 = vpop.f32.mrb[35].mxu0 }
 0x1d1   : > { %v1267_v61 = vadd.f32 %v1961_v56, %v2623_v37  ;;  %v1964_v62 = vadd.f32 %v1963_v60, %v1962_v20  ;;  %v2009_v22 = vpop.f32.mrb[35].mxu1  ;;  %v1363_v63 = vpack.c.bf16 %v1357_v55, %v1356_v51 }
 0x1d2   : > { %v2010_v0 = vadd.f32 %v2009_v22, %v2008_v59 }
 0x1d3   : > { %v1339_v1 = vadd.f32 %v2007_v58, %v1267_v61  ;;  %v1270_v2 = vadd.f32 %v1964_v62, %v2626_v39  ;;  %2055 = vmatmul.mubr.bf16.gmra.mrb[48].mxu0 %v1363_v63 }
 0x1d5   : > { %v1342_v3 = vadd.f32 %v2010_v0, %v1270_v2  ;;  %v1965_v5 = vpop.f32.mrb[36].mxu0  ;;  %v1358_v8 = vmax.f32 %v1339_v1, 0.0 }
 0x1d6   : > { %v2011_v40 = vpop.f32.mrb[36].mxu1  ;;  %v1966_v7 = vpop.f32.mrb[37].mxu0 }
 0x1d7   : > { %v1359_v9 = vmax.f32 %v1342_v3, 0.0  ;;  %v1967_v10 = vadd.f32 %v1966_v7, %v1965_v5  ;;  %v2012_v11 = vpop.f32.mrb[37].mxu1  ;;  %v1968_v12 = vpop.f32.mrb[38].mxu0 }
 0x1d8   : > { %v2013_v13 = vadd.f32 %v2012_v11, %v2011_v40  ;;  %v2014_v37 = vpop.f32.mrb[38].mxu1  ;;  %v1969_v14 = vpop.f32.mrb[39].mxu0 }
 0x1d9   : > { %v1364_v15 = vpack.c.bf16 %v1359_v9, %v1358_v8  ;;  %v1275_v16 = vadd.f32 %v1967_v10, %v2629_v53  ;;  %v2015_v17 = vpop.f32.mrb[39].mxu1 }
 0x1db   : > { %v1347_v18 = vadd.f32 %v2013_v13, %v1275_v16  ;;  %2059 = vmatmul.mubr.bf16.vlgmr.msra.gmra.mrb[40].mxu1 %v1364_v15 }
 0x1dc   : > { %2062 = vmatprep.mubr.msk.bf16.mxu1 %vm2227_vm0, %v2226_v30 }
 0x1dd   : > { %v1360_v39 = vmax.f32 %v1347_v18, 0.0 }
 0x1df   : > { %v1365_v19 = vpack.c.bf16 %v1360_v39, %v1360_v39 }
 0x1e3   : > { %2063 = vmatmul.mubr.bf16.gmra.mrb[44].mxu1 %v1365_v19 }
 0x296   : > { %v1471_v21 = vpop.f32.mrb[40].mxu0 }
 0x297   : > { %v1472_v23 = vadd.f32 %v1822_v52, %v1471_v21  ;;  %v2048_v24 = vpop.f32.mrb[41].mxu0 }
 0x298   : > { %v1474_v30 = vpop.f32.mrb[42].mxu0 }
 0x299   : > { %v1509_v53 = vmax.f32 %v1472_v23, 0.0  ;;  %v1475_v25 = vadd.f32 %v1822_v52, %v1474_v30  ;;  %v2049_v54 = vpop.f32.mrb[43].mxu0 }
 0x29b   : > { %1519 = vst.msk [vmem:[%s2654_s17] sm:$0xff] %vm1518_vm1, %v1509_v53  ;;  %v1510_v26 = vmax.f32 %v1475_v25, 0.0 }
 0x29d   : > { %1520 = vst.msk [vmem:[%s2654_s17 + $0x8] sm:$0xff] %vm1518_vm1, %v1510_v26 }
 0x29e   : > { %v1479_v27 = vpop.f32.mrb[44].mxu0 }
 0x29f   : > { %v1480_v28 = vadd.f32 %v1822_v52, %v1479_v27  ;;  %v2052_v29 = vpop.f32.mrb[45].mxu0 }
 0x2a0   : > { %v1482_v31 = vpop.f32.mrb[46].mxu0 }
 0x2a1   : > { %v1511_v32 = vmax.f32 %v1480_v28, 0.0  ;;  %v1483_v33 = vadd.f32 %v1822_v52, %v1482_v31  ;;  %v2053_v34 = vpop.f32.mrb[47].mxu0 }
 0x2a3   : > { %1521 = vst.msk [vmem:[%s2654_s17 + $0x10] sm:$0xff] %vm1518_vm1, %v1511_v32  ;;  %v1512_v35 = vmax.f32 %v1483_v33, 0.0 }
 0x2a5   : > { %1522 = vst.msk [vmem:[%s2654_s17 + $0x18] sm:$0xff] %vm1518_vm1, %v1512_v35 }
 0x2a6   : > { %v1487_v4 = vpop.f32.mrb[48].mxu0 }
 0x2a7   : > { %v1488_v36 = vadd.f32 %v1822_v52, %v1487_v4  ;;  %v2056_v38 = vpop.f32.mrb[49].mxu0 }
 0x2a8   : > { %v1490_v41 = vpop.f32.mrb[50].mxu0 }
 0x2a9   : > { %v1513_v42 = vmax.f32 %v1488_v36, 0.0  ;;  %v1491_v6 = vadd.f32 %v1822_v52, %v1490_v41  ;;  %v2057_v43 = vpop.f32.mrb[51].mxu0 }
 0x2ab   : > { %1523 = vst.msk [vmem:[%s2654_s17 + $0x20] sm:$0xff] %vm1518_vm1, %v1513_v42  ;;  %v1514_v44 = vmax.f32 %v1491_v6, 0.0 }
 0x2ad   : > { %1524 = vst.msk [vmem:[%s2654_s17 + $0x28] sm:$0xff] %vm1518_vm1, %v1514_v44 }
 0x2ae   : > { %v1495_v45 = vpop.f32.mrb[40].mxu1 }
 0x2af   : > { %v1496_v46 = vadd.f32 %v1822_v52, %v1495_v45  ;;  %v2060_v47 = vpop.f32.mrb[41].mxu1 }
 0x2b0   : > { %v1498_v48 = vpop.f32.mrb[42].mxu1 }
 0x2b1   : > { %v1515_v49 = vmax.f32 %v1496_v46, 0.0  ;;  %v1499_v50 = vadd.f32 %v1822_v52, %v1498_v48  ;;  %v2061_v51 = vpop.f32.mrb[43].mxu1 }
 0x2b3   : > { %1525 = vst.msk [vmem:[%s2654_s17 + $0x30] sm:$0xff] %vm1518_vm1, %v1515_v49  ;;  %v1516_v55 = vmax.f32 %v1499_v50, 0.0 }
 0x2b5   : > { %1526 = vst.msk [vmem:[%s2654_s17 + $0x38] sm:$0xff] %vm1518_vm1, %v1516_v55 }
 0x2b6   : > { %v1503_v56 = vpop.f32.mrb[44].mxu1 }
 0x2b7   : > { %v1504_v57 = vadd.f32 %v1822_v52, %v1503_v56  ;;  %v2064_v20 = vpop.f32.mrb[45].mxu1 }
 0x2b8   : > { %v1506_v58 = vpop.f32.mrb[46].mxu1 }
 0x2b9   : > { %v1517_v59 = vmax.f32 %v1504_v57, 0.0  ;;  %v2065_v60 = vpop.f32.mrb[47].mxu1 }
 0x2bb   : > { %1527 = vst.msk [vmem:[%s2654_s17 + $0x40] sm:$0xff] %vm1518_vm1, %v1517_v59 }
 0x2bc PF: > { %s16_s18 = sadd.s32 1, %s2219_s18  }
 0x2bd   : > { %p13_p3 = scmp.ge.s32.totalorder %s16_s18, 6  }
 0x2bf   :  { %15 = sbr.rel (!%p13_p3) target bundleno = 1 (0x1), region = 75 }
 0x2c6   :  { %1550 = vsyncpa [#allocation3], 1 }
 0x2c7   :  { %1552 = vsyncpa [#allocation3 + $0x1], 1 }

</bundles_post_ra>
